<compile_context>
chip_gen: v6e
topology: v6e:2x2x1
jax: 0.10.0
libtpu: 0.0.40
codegen_flags: <defaults>
</compile_context>

<pallas_src>
import functools
import math

import numpy as np

import jax
import jax.numpy as jnp
from jax import lax
from jax.experimental import pallas as pl
from jax.experimental.pallas import tpu as pltpu


# --------------------------------------------------------------------------- #
# Pallas kernel: one (batch, macro-row tile) step = RH*RW tap matmuls, one
# phase-packed lane-dense store.
# --------------------------------------------------------------------------- #
def _phase_packed_kernel(x_ref, w_ref, b_ref, o_ref, *,
                         RH, RW, TR, nWp, Cin, offH, offW):
    """
    x_ref : VMEM (1, Hh, Wh, Cin)        haloed NHWC input (full image per batch)
    w_ref : VMEM (RH*RW, Cin, PCpad)     per-tap phase-packed weights
    b_ref : VMEM (1, PCpad) float32      phase-packed bias (f32, added pre-downcast)
    o_ref : VMEM (1, TR*nWp, PCpad)      phase-packed output tile (lane-dense)
    """
    t = pl.program_id(1)
    r0 = t * TR                                   # first macro row of this tile

    acc = b_ref[...]                              # (1, PCpad) float32, broadcasts
    for dh in range(RH):
        for dw in range(RW):
            # Dynamic start only on the untiled leading (row) dim; the tiled
            # (W, Cin) dims use static starts -> plain sliced vector loads,
            # no masked stores anywhere in the kernel.
            xw = x_ref[0, pl.ds(r0 + dh + offH, TR), pl.ds(dw + offW, nWp), :]
            xw = xw.reshape(TR * nWp, Cin)        # nWp % 8 == 0 -> layout-trivial
            acc = acc + jnp.dot(xw, w_ref[dh * RW + dw],
                                preferred_element_type=jnp.float32)
    o_ref[0] = acc.astype(o_ref.dtype)            # unmasked full-lane store


# --------------------------------------------------------------------------- #
# Trace-time planning helpers (pure Python / numpy).
# --------------------------------------------------------------------------- #
def _axis_union_plan(k, s, p, d):
    """Union tap window along one axis for the phase-packed formulation.

    Output index oh = qh*s + r receives x[qh + delta] * w[kk] whenever
    (r + p - kk*d) is divisible by s with delta = (r + p - kk*d) // s.
    Returns (delta_min, R, kmap) where kmap[delta - delta_min, r] is the kernel
    tap index for that (delta, phase) pair, or -1 if none.
    """
    pairs = []
    for r in range(s):
        for kk in range(k):
            num = r + p - kk * d
            if num % s == 0:
                pairs.append((r, kk, num // s))
    dmin = min(dd for _, _, dd in pairs)
    dmax = max(dd for _, _, dd in pairs)
    R = dmax - dmin + 1
    kmap = np.full((R, s), -1, dtype=np.int64)
    for r, kk, dd in pairs:
        kmap[dd - dmin, r] = kk            # (delta, r) -> unique kk
    return dmin, R, kmap


def _vmem_block_bytes(shape, itemsize):
    """Approximate VMEM footprint of one block ((8,128)-tile padded)."""
    shape = tuple(int(s) for s in shape)
    if len(shape) == 1:
        shape = (1,) + shape
    lead = 1
    for s in shape[:-2]:
        lead *= s
    sub = -(-shape[-2] // 8) * 8
    lane = -(-shape[-1] // 128) * 128
    return lead * sub * lane * itemsize


# --------------------------------------------------------------------------- #
# Public wrapper (NCHW in / NCHW out, matches F.conv_transpose2d).
# --------------------------------------------------------------------------- #
def meta_conv_transpose2d(x, weight, bias, *, stride, padding, output_padding,
                          dilation, groups=1):
    """
    x      : (N, Cin, H, W)
    weight : (Cin, Cout // groups, kH, kW)   (PyTorch ConvTranspose2d layout)
    bias   : (Cout,) or None
    """
    assert groups == 1  # TODO(synk): grouped transposed conv not implemented.
    N, Cin, H, W = x.shape
    w_cin, Cout, kH, kW = weight.shape
    assert w_cin == Cin
    sH, sW = stride
    pH, pW = padding
    opH, opW = output_padding
    dH, dW = dilation

    # Exact PyTorch ConvTranspose2d output-size formula.
    Ho = (H - 1) * sH - 2 * pH + dH * (kH - 1) + opH + 1
    Wo = (W - 1) * sW - 2 * pW + dW * (kW - 1) + opW + 1
    nH = -(-Ho // sH)                      # macro rows
    nW = -(-Wo // sW)                      # macro cols
    nWp = -(-nW // 8) * 8                  # sublane-friendly macro-col padding

    dminH, RH, khm = _axis_union_plan(kH, sH, pH, dH)
    dminW, RW, kwm = _axis_union_plan(kW, sW, pW, dW)

    P = sH * sW
    PC = P * Cout
    PCpad = -(-PC // 128) * 128            # lane-dense phase-packed output width

    # Macro-row tile: ~128 rows of (macro-row, macro-col) positions per step.
    TR = min(max(1, 128 // nWp), nH)
    nH_pad = -(-nH // TR) * TR
    n_tiles = nH_pad // TR

    # ---- halo so every (macro + delta) read is in-bounds (zero padded) ----
    offH, offW = max(dminH, 0), max(dminW, 0)
    haloT, haloL = max(0, -dminH), max(0, -dminW)
    haloB = max(0, (nH_pad - 1) + (RH - 1) + dminH - (H - 1))
    haloR = max(0, (nWp - 1) + (RW - 1) + dminW - (W - 1))

    x_nhwc = jnp.transpose(x, (0, 2, 3, 1))
    x_pad = jnp.pad(x_nhwc, ((0, 0), (haloT, haloB), (haloL, haloR), (0, 0)))
    Hh, Wh = x_pad.shape[1], x_pad.shape[2]

    # ---- phase-packed weight (RH*RW, Cin, PCpad): ONE vectorized gather ----
    khc = np.maximum(khm, 0)
    kwc = np.maximum(kwm, 0)
    w_g = jnp.take(weight, jnp.asarray(khc.reshape(-1), jnp.int32), axis=2)
    w_g = w_g.reshape(Cin, Cout, RH, sH, kW)
    w_g = jnp.take(w_g, jnp.asarray(kwc.reshape(-1), jnp.int32), axis=4)
    w_g = w_g.reshape(Cin, Cout, RH, sH, RW, sW)
    valid = (khm >= 0)[:, :, None, None] & (kwm >= 0)[None, None, :, :]
    w_g = w_g * jnp.asarray(valid, w_g.dtype)[None, None]
    w_g = jnp.transpose(w_g, (2, 4, 0, 3, 5, 1))     # (RH, RW, Cin, sH, sW, Cout)
    w_g = w_g.reshape(RH * RW, Cin, PC).astype(x.dtype)
    w_g = jnp.pad(w_g, ((0, 0), (0, 0), (0, PCpad - PC)))

    # Bias stays float32 (added to the f32 accumulator, downcast once).
    b = jnp.zeros((Cout,), jnp.float32) if bias is None else bias.astype(jnp.float32)
    b_pc = jnp.pad(jnp.tile(b, P), (0, PCpad - PC)).reshape(1, PCpad)

    kernel = functools.partial(
        _phase_packed_kernel,
        RH=RH, RW=RW, TR=TR, nWp=nWp, Cin=Cin, offH=offH, offW=offW)

    # ---- derived VMEM budget (review: compute, don't guess) ---------------
    isz = np.dtype(x.dtype).itemsize
    xb = _vmem_block_bytes((1, Hh, Wh, Cin), isz)
    wb = _vmem_block_bytes((RH * RW, Cin, PCpad), isz)
    bb = _vmem_block_bytes((1, PCpad), 4)
    ob = _vmem_block_bytes((1, TR * nWp, PCpad), isz)
    need = 2 * (xb + ob) + wb + bb                      # double-buffered in/out
    vmem_limit = int(min(max(need + (8 << 20), 16 << 20), 48 << 20))  # v7x-safe
    vmem_limit = int(max(vmem_limit, need + (2 << 20)))  # never starve the kernel

    out = pl.pallas_call(
        kernel,
        out_shape=jax.ShapeDtypeStruct((N, nH_pad * nWp, PCpad), x.dtype),
        grid_spec=pltpu.PrefetchScalarGridSpec(
            num_scalar_prefetch=0,
            grid=(N, n_tiles),
            in_specs=[
                # Full haloed image per batch; index ignores the tile axis so
                # consecutive row-tile steps reuse the block without re-DMA.
                pl.BlockSpec((1, Hh, Wh, Cin), lambda n, t: (n, 0, 0, 0)),
                # Weights / bias: constant index map -> fetched once, reused.
                pl.BlockSpec((RH * RW, Cin, PCpad), lambda n, t: (0, 0, 0)),
                pl.BlockSpec((1, PCpad), lambda n, t: (0, 0)),
            ],
            out_specs=pl.BlockSpec((1, TR * nWp, PCpad), lambda n, t: (n, t, 0)),
        ),
        compiler_params=pltpu.CompilerParams(
            # Batch axis "parallel" (v7x megacore splits on N -> each input
            # block DMA'd once); row-tile axis "arbitrary" to keep the input
            # block resident across tiles on one core.
            dimension_semantics=("parallel", "arbitrary"),
            vmem_limit_bytes=vmem_limit,
        ),
    )(x_pad, w_g, b_pc)

    # ---- glue: un-pack phases with a single transpose/reshape, crop, NCHW --
    out = out[:, :, :PC].reshape(N, nH_pad, nWp, sH, sW, Cout)
    out = jnp.transpose(out, (0, 1, 3, 2, 4, 5))        # (N, nH, sH, nWp, sW, C)
    out = out.reshape(N, nH_pad * sH, nWp * sW, Cout)
    return jnp.transpose(out[:, :Ho, :Wo, :], (0, 3, 1, 2))


# --------------------------------------------------------------------------- #
# Pure-lax reference (textbook transpose-conv identity).
# --------------------------------------------------------------------------- #
def _reference_conv_transpose2d(x, weight, bias, *, stride, padding,
                                output_padding, dilation):
    Cin, Cout, kH, kW = weight.shape
    sH, sW = stride
    pH, pW = padding
    opH, opW = output_padding
    dH, dW = dilation
    w_flip = jnp.transpose(jnp.flip(weight, (2, 3)), (1, 0, 2, 3))  # OIHW
    out = lax.conv_general_dilated(
        x, w_flip,
        window_strides=(1, 1),
        padding=[(dH * (kH - 1) - pH, dH * (kH - 1) - pH + opH),
                 (dW * (kW - 1) - pW, dW * (kW - 1) - pW + opW)],
        lhs_dilation=(sH, sW),
        rhs_dilation=(dH, dW),
        dimension_numbers=('NCHW', 'OIHW', 'NCHW'),
    )
    if bias is not None:
        out = out + bias[None, :, None, None]
    return out


if __name__ == "__main__":
    def run_case(key, N, Cin, Cout, H, W, ksz, stride, padding, output_padding,
                 dilation, use_bias):
        kx, kw, kb = jax.random.split(key, 3)
        x = jax.random.normal(kx, (N, Cin, H, W), jnp.float32)
        fan = Cin * ksz[0] * ksz[1]
        weight = jax.random.uniform(kw, (Cin, Cout, ksz[0], ksz[1]), jnp.float32,
                                    minval=-1.0, maxval=1.0) / jnp.sqrt(fan)
        bias = (jax.random.uniform(kb, (Cout,), jnp.float32,
                                   minval=-1.0, maxval=1.0) / jnp.sqrt(fan)
                ) if use_bias else None

        out = meta_conv_transpose2d(
            x, weight, bias, stride=stride, padding=padding,
            output_padding=output_padding, dilation=dilation)
        out = jax.block_until_ready(out)

        ref = _reference_conv_transpose2d(
            x, weight, bias, stride=stride, padding=padding,
            output_padding=output_padding, dilation=dilation)

        Ho = (H - 1) * stride[0] - 2 * padding[0] + dilation[0] * (ksz[0] - 1) \
            + output_padding[0] + 1
        Wo = (W - 1) * stride[1] - 2 * padding[1] + dilation[1] * (ksz[1] - 1) \
            + output_padding[1] + 1
        assert out.shape == (N, Cout, Ho, Wo), (out.shape, (N, Cout, Ho, Wo))
        err = jnp.max(jnp.abs(out - ref))
        assert jnp.allclose(out, ref, atol=1e-3, rtol=1e-3), \
            f"max abs err = {err}"

    key = jax.random.PRNGKey(0)
    k1, k2, k3 = jax.random.split(key, 3)

    # Primary config: MetaConvTranspose2d(4, 8, kernel_size=3, stride=2, padding=1)
    run_case(k1, 2, 4, 8, 16, 16, (3, 3), (2, 2), (1, 1), (0, 0), (1, 1), True)
    # Kernel-4 upsampling "deconv" with output_padding.
    run_case(k2, 2, 3, 5, 5, 7, (4, 4), (2, 2), (1, 1), (1, 1), (1, 1), True)
    # Dilated, asymmetric output_padding, no bias.
    run_case(k3, 1, 3, 2, 6, 6, (3, 3), (2, 2), (2, 2), (1, 0), (2, 2), False)

    print("KERNEL_OK")
</pallas_src>

<mosaic_0001>
module attributes {stable_mosaic.version = 11 : i64} {
  func.func @_phase_packed_kernel(%arg0: i32, %arg1: i32, %arg2: memref<1x17x17x4xf32, #tpu.memory_space<vmem>>, %arg3: memref<4x4x128xf32, #tpu.memory_space<vmem>>, %arg4: memref<1x128xf32, #tpu.memory_space<vmem>>, %arg5: memref<1x128x128xf32, #tpu.memory_space<vmem>>) attributes {dimension_semantics = [#tpu.dimension_semantics<parallel>, #tpu.dimension_semantics<arbitrary>], iteration_bounds = array<i64: 2, 2>, scalar_prefetch = 0 : i64, scratch_operands = 0 : i64, tpu.core_type = #tpu.core_type<tc>, window_params = [{transform_indices = @transform_0, window_bounds = array<i64: 1, 17, 17, 4>}, {pipeline_mode = #tpu.pipeline_mode<synchronous>, transform_indices = @transform_1, window_bounds = array<i64: 4, 4, 128>}, {pipeline_mode = #tpu.pipeline_mode<synchronous>, transform_indices = @transform_2, window_bounds = array<i64: 1, 128>}, {transform_indices = @transform_3, window_bounds = array<i64: 1, 128, 128>}]} {
    %c8_i32 = arith.constant 8 : i32
    %0 = arith.muli %arg1, %c8_i32 : i32
    %c0 = arith.constant 0 : index
    %c0_0 = arith.constant 0 : index
    %1 = vector.load %arg4[%c0, %c0_0] : memref<1x128xf32, #tpu.memory_space<vmem>>, vector<1x128xf32>
    %c0_i32 = arith.constant 0 : i32
    %2 = arith.addi %0, %c0_i32 : i32
    %c0_i32_1 = arith.constant 0 : i32
    %3 = arith.addi %2, %c0_i32_1 : i32
    %c0_2 = arith.constant 0 : index
    %4 = arith.index_cast %3 : i32 to index
    %c0_3 = arith.constant 0 : index
    %c0_4 = arith.constant 0 : index
    %5 = vector.load %arg2[%c0_2, %4, %c0_3, %c0_4] : memref<1x17x17x4xf32, #tpu.memory_space<vmem>>, vector<1x8x16x4xf32>
    %6 = vector.shape_cast %5 : vector<1x8x16x4xf32> to vector<8x16x4xf32>
    %7 = vector.shape_cast %6 : vector<8x16x4xf32> to vector<128x4xf32>
    %c0_5 = arith.constant 0 : index
    %c0_6 = arith.constant 0 : index
    %c0_7 = arith.constant 0 : index
    %8 = vector.load %arg3[%c0_5, %c0_6, %c0_7] : memref<4x4x128xf32, #tpu.memory_space<vmem>>, vector<1x4x128xf32>
    %9 = vector.shape_cast %8 : vector<1x4x128xf32> to vector<4x128xf32>
    %cst = arith.constant dense<0.000000e+00> : vector<128x128xf32>
    %10 = tpu.matmul %7, %9, %cst {dimension_numbers = #tpu.dot_dimension_numbers<[1], [0], [0], [1], [0, 0, 1, 1], [], []>} : vector<128x4xf32>, vector<4x128xf32>, vector<128x128xf32> -> vector<128x128xf32>
    %11 = vector.broadcast %1 : vector<1x128xf32> to vector<128x128xf32>
    %12 = arith.addf %11, %10 : vector<128x128xf32>
    %c0_i32_8 = arith.constant 0 : i32
    %13 = arith.addi %0, %c0_i32_8 : i32
    %c0_i32_9 = arith.constant 0 : i32
    %14 = arith.addi %13, %c0_i32_9 : i32
    %c0_10 = arith.constant 0 : index
    %15 = arith.index_cast %14 : i32 to index
    %c1 = arith.constant 1 : index
    %c0_11 = arith.constant 0 : index
    %16 = vector.load %arg2[%c0_10, %15, %c1, %c0_11] : memref<1x17x17x4xf32, #tpu.memory_space<vmem>>, vector<1x8x16x4xf32>
    %17 = vector.shape_cast %16 : vector<1x8x16x4xf32> to vector<8x16x4xf32>
    %18 = vector.shape_cast %17 : vector<8x16x4xf32> to vector<128x4xf32>
    %c1_12 = arith.constant 1 : index
    %c0_13 = arith.constant 0 : index
    %c0_14 = arith.constant 0 : index
    %19 = vector.load %arg3[%c1_12, %c0_13, %c0_14] : memref<4x4x128xf32, #tpu.memory_space<vmem>>, vector<1x4x128xf32>
    %20 = vector.shape_cast %19 : vector<1x4x128xf32> to vector<4x128xf32>
    %cst_15 = arith.constant dense<0.000000e+00> : vector<128x128xf32>
    %21 = tpu.matmul %18, %20, %cst_15 {dimension_numbers = #tpu.dot_dimension_numbers<[1], [0], [0], [1], [0, 0, 1, 1], [], []>} : vector<128x4xf32>, vector<4x128xf32>, vector<128x128xf32> -> vector<128x128xf32>
    %22 = arith.addf %12, %21 : vector<128x128xf32>
    %c1_i32 = arith.constant 1 : i32
    %23 = arith.addi %0, %c1_i32 : i32
    %c0_i32_16 = arith.constant 0 : i32
    %24 = arith.addi %23, %c0_i32_16 : i32
    %c0_17 = arith.constant 0 : index
    %25 = arith.index_cast %24 : i32 to index
    %c0_18 = arith.constant 0 : index
    %c0_19 = arith.constant 0 : index
    %26 = vector.load %arg2[%c0_17, %25, %c0_18, %c0_19] : memref<1x17x17x4xf32, #tpu.memory_space<vmem>>, vector<1x8x16x4xf32>
    %27 = vector.shape_cast %26 : vector<1x8x16x4xf32> to vector<8x16x4xf32>
    %28 = vector.shape_cast %27 : vector<8x16x4xf32> to vector<128x4xf32>
    %c2 = arith.constant 2 : index
    %c0_20 = arith.constant 0 : index
    %c0_21 = arith.constant 0 : index
    %29 = vector.load %arg3[%c2, %c0_20, %c0_21] : memref<4x4x128xf32, #tpu.memory_space<vmem>>, vector<1x4x128xf32>
    %30 = vector.shape_cast %29 : vector<1x4x128xf32> to vector<4x128xf32>
    %cst_22 = arith.constant dense<0.000000e+00> : vector<128x128xf32>
    %31 = tpu.matmul %28, %30, %cst_22 {dimension_numbers = #tpu.dot_dimension_numbers<[1], [0], [0], [1], [0, 0, 1, 1], [], []>} : vector<128x4xf32>, vector<4x128xf32>, vector<128x128xf32> -> vector<128x128xf32>
    %32 = arith.addf %22, %31 : vector<128x128xf32>
    %c1_i32_23 = arith.constant 1 : i32
    %33 = arith.addi %0, %c1_i32_23 : i32
    %c0_i32_24 = arith.constant 0 : i32
    %34 = arith.addi %33, %c0_i32_24 : i32
    %c0_25 = arith.constant 0 : index
    %35 = arith.index_cast %34 : i32 to index
    %c1_26 = arith.constant 1 : index
    %c0_27 = arith.constant 0 : index
    %36 = vector.load %arg2[%c0_25, %35, %c1_26, %c0_27] : memref<1x17x17x4xf32, #tpu.memory_space<vmem>>, vector<1x8x16x4xf32>
    %37 = vector.shape_cast %36 : vector<1x8x16x4xf32> to vector<8x16x4xf32>
    %38 = vector.shape_cast %37 : vector<8x16x4xf32> to vector<128x4xf32>
    %c3 = arith.constant 3 : index
    %c0_28 = arith.constant 0 : index
    %c0_29 = arith.constant 0 : index
    %39 = vector.load %arg3[%c3, %c0_28, %c0_29] : memref<4x4x128xf32, #tpu.memory_space<vmem>>, vector<1x4x128xf32>
    %40 = vector.shape_cast %39 : vector<1x4x128xf32> to vector<4x128xf32>
    %cst_30 = arith.constant dense<0.000000e+00> : vector<128x128xf32>
    %41 = tpu.matmul %38, %40, %cst_30 {dimension_numbers = #tpu.dot_dimension_numbers<[1], [0], [0], [1], [0, 0, 1, 1], [], []>} : vector<128x4xf32>, vector<4x128xf32>, vector<128x128xf32> -> vector<128x128xf32>
    %42 = arith.addf %32, %41 : vector<128x128xf32>
    %c0_31 = arith.constant 0 : index
    %c0_32 = arith.constant 0 : index
    %c0_33 = arith.constant 0 : index
    %43 = vector.load %arg5[%c0_31, %c0_32, %c0_33] : memref<1x128x128xf32, #tpu.memory_space<vmem>>, vector<1x128x128xf32>
    %44 = vector.shape_cast %43 : vector<1x128x128xf32> to vector<128x128xf32>
    %45 = vector.shape_cast %42 : vector<128x128xf32> to vector<1x128x128xf32>
    tpu.vector_store %arg5[%c0_31, %c0_32, %c0_33], %45 {strides = array<i32>} : memref<1x128x128xf32, #tpu.memory_space<vmem>>, vector<1x128x128xf32>,
    return
  }
  func.func @transform_0(%arg0: i32, %arg1: i32) -> (i32, i32, i32, i32) {
    %c0_i32 = arith.constant 0 : i32
    %c0_i32_0 = arith.constant 0 : i32
    %c0_i32_1 = arith.constant 0 : i32
    %c0_i32_2 = arith.constant 0 : i32
    return %arg0, %c0_i32, %c0_i32_0, %c0_i32_1 : i32, i32, i32, i32
  }
  func.func @transform_1(%arg0: i32, %arg1: i32) -> (i32, i32, i32) {
    %c0_i32 = arith.constant 0 : i32
    %c0_i32_0 = arith.constant 0 : i32
    %c0_i32_1 = arith.constant 0 : i32
    %c0_i32_2 = arith.constant 0 : i32
    return %c0_i32, %c0_i32_0, %c0_i32_1 : i32, i32, i32
  }
  func.func @transform_2(%arg0: i32, %arg1: i32) -> (i32, i32) {
    %c0_i32 = arith.constant 0 : i32
    %c0_i32_0 = arith.constant 0 : i32
    %c0_i32_1 = arith.constant 0 : i32
    return %c0_i32, %c0_i32_0 : i32, i32
  }
  func.func @transform_3(%arg0: i32, %arg1: i32) -> (i32, i32, i32) {
    %c0_i32 = arith.constant 0 : i32
    %c0_i32_0 = arith.constant 0 : i32
    return %arg0, %arg1, %c0_i32 : i32, i32, i32
  }
}

</mosaic_0001>

<bundles_post_ra>
// kernel: tpu_custom_call.1
= control target key start
LH: loop header
LB: loop body
LE: loop exit
PB: predicated region body
PF: predicated region fallthrough
CT: control target
= control target key end

     0   :  { %8 = vsyncpa [#allocation3], 0  ;;  %s2068_s0 = inlined_call_operand.vmem [shape: f32[2,17,17,4], index: 0, kind: input, shape index: {}]   ;;  %s2069_s1 = inlined_call_operand.vmem [shape: f32[4,4,128], index: 1, kind: input, shape index: {}]   ;;  %s2070_s2 = inlined_call_operand.vmem [shape: f32[1,128], index: 2, kind: input, shape index: {}]   ;;  %s2071_s3 = inlined_call_operand.hbm [shape: f32[2,256,128], index: 3, kind: output, shape index: {}]  }
   0x1   :  { %10 = vsyncpa [#allocation3 + $0x1], 0  ;;  %s1716_s12 = smov 0   ;;  %s1718_s13 = smov 0  }
   0x2   :  { %s1720_s14 = smov 0   ;;  %s1722_s15 = smov 0  }
   0x3   :  { %s1724_s16 = smov 0   ;;  %s1726_s17 = smov 0  }
   0x4   :  { %s1728_s18 = smov 0   ;;  %s1730_s19 = smov 0  }
   0x5 LB: > { %s1232_s20 = sadd.s32 4294967295, %s1691_s19   ;;  %s1233_s21 = sadd.s32 4294967294, %s1691_s19   ;;  %s1691_s19 = sphi %s1730_s19, %s16_s19   ;;  %s1687_s18 = sphi %s1728_s18, %s2080_s18   ;;  %s1683_s17 = sphi %s1726_s17, %s2079_s17   ;;  %s1679_s16 = sphi %s1724_s16, %s2078_s16   ;;  %s1675_s15 = sphi %s1722_s15, %s2077_s15   ;;  %s1671_s14 = sphi %s1720_s14, %s2076_s14   ;;  %s1667_s13 = sphi %s1718_s13, %s2075_s13   ;;  %s1663_s12 = sphi %s1716_s12, %s2074_s12  }
   0x6   : > { %s25_s22 = sadd.s32 1, %s1683_s17  ;;  %s28_s23 = sadd.s32 1, %s1687_s18 }
   0x7   : > { %p26_p0 = scmp.ge.s32.totalorder %s25_s22, 2  ;;  %p115_p1 = scmp.ne.s32.totalorder %s1671_s14, %s1667_s13 }
   0x8   : > { %p116_p2 = scmp.eq.s32.totalorder %s1232_s20, 3  ;;  %p121_p5 = scmp.ne.s32.totalorder %s1667_s13, %s1663_s12 }
   0x9   : > { %s2082_s22 = smov (%p26_p0, %s25_s22), 0  ;;  %s2084_s23 = smov (!%p26_p0, %s28_s23), %s1687_s18 }
   0xa   : > { %s101_s24 = ssub.s32 %s1683_s17, %s2082_s22  ;;  %p1767_p3 = por %p116_p2, %p115_p1 }
   0xb   : > { %p30_p4 = scmp.ge.s32.totalorder %s2084_s23, 2  ;;  %p122_p6 = scmp.eq.s32.totalorder %s1233_s21, 3 }
   0xc   : > { %p1236_p7 = scmp.ge.s32.totalorder %s1691_s19, 1  ;;  %p154_p9 = scmp.lt.s32.totalorder %s1691_s19, 5 }
   0xd   : > { %s2086_s23 = smov (%p30_p4, %s2084_s23), 0  ;;  %p1776_p8 = por %p122_p6, %p121_p5 }
   0xe   : > { %s100_s27 = ssub.s32 %s1687_s18, %s2086_s23  ;;  %s105_s28 = sadd.s32 1, %s1671_s14 }
   0xf   : > { %s102_s29 = sor.u32 %s101_s24, %s100_s27  ;;  %p155_p10 = pnand %p1236_p7, %p154_p9 }
  0x10   : > { %p103_p11 = scmp.eq.s32.totalorder %s102_s29, 0  ;;  %p178_p12 = scmp.lt.s32.totalorder (!%p155_p10), %s1679_s16, 1 }
  0x11   : > { %158 = sbr.rel (%p155_p10) target bundleno = 303 (0x12f), region = 32  ;;  %s175_s7 = sand.u32 (!%p155_p10), 1, %s1667_s13  }
  0x12   : > { %s1785_s30 = scalar_select %p103_p11, %s1671_s14, %s105_s28  }
  0x13   : > { %s1240_s21 = smul.u32 (!%p155_p10), 192, %s1675_s15  ;;  %s1237_s8 = sshll.u32 (!%p155_p10), %s175_s7, 7 }
  0x14   : > { %s1961_s9 = scalar_lea.vmem (!%p155_p10), [#allocation2], %s1237_s8  ;;  %s1348_s10 = sshll.u32 (!%p155_p10), %s1675_s15, 4 }
  0x15   : > { %s1349_s11 = sshll.u32 (!%p155_p10), %s1679_s16, 5  ;;  %s2017_s28 = scalar_lea.sflag (!%p155_p10), [#allocation3], %s175_s7 }
  0x16   : > { %v204_v0 = vld [vmem:[%s2069_s1] sm:$0xf]  ;;  %vm254_vm0 = vcmask 1043456   ;;  %v1259_v1 = vld [vmem:[%s2069_s1 + $0x4] sm:$0xf]  ;;  %s179_s20 = scalar_select %p178_p12, %s1679_s16, 1 }
  0x17   : > { %1421 = vmatprep.subr.msk.mxu0 %vm254_vm0, %v204_v0  ;;  %1447 = vmatprep.subr.msk.mxu1 %vm254_vm0, %v1259_v1  ;;  %v1295_v2 = vld [vmem:[%s2069_s1 + $0x8] sm:$0xf]  ;;  %v1329_v3 = vld [vmem:[%s2069_s1 + $0xc] sm:$0xf]  ;;  %vm205_vm1 = vcmask 31744   ;;  %s1150_s16 = sshll.u32 %s1961_s9, 4  ;;  %s2011_s16 = int_to_ptr.vmem [resolvable:$true] %s1150_s16 }
  0x18   : > { %1422 = vmatpush3.msk.msra.mxu0 %vm254_vm0, %v204_v0  ;;  %1448 = vmatpush3.msk.msra.mxu1 %vm254_vm0, %v1259_v1  ;;  %s1525_s24 = smul.u32 408, %s179_s20  ;;  %v1934_v0 = vld [vmem:[%s2070_s2] ss:$0 sm:$0xff]  ;;  %s1147_s20 = sadd.s32 %s1349_s11, %s1348_s10 }
  0x19   : > { %1473 = vmatprep.subr.msk.mxu0 %vm254_vm0, %v1295_v2  ;;  %1499 = vmatprep.subr.msk.mxu1 %vm254_vm0, %v1329_v3  ;;  %s1350_s15 = sshll.u32 %s1147_s20, 7 }
  0x1a   : > { %s182_s29 = scalar_lea.vmem %s2068_s0, %s1525_s24  ;;  %s2009_s27 = scalar_lea.hbm %s2071_s3, %s1350_s15 }
  0x1b   : > { %s1811_s4 = scalar_lea.vmem %s182_s29, %s1240_s21  ;;  %s1599_s29 = scalar_lea.vmem %s2011_s16, 2048 }
  0x1c   : > { %v188_v4 = vld [vmem:[%s1811_s4] sm:$0xff]  ;;  %v189_v6 = vld [vmem:[%s1811_s4 + $0x8] sm:$0xff]  ;;  %v190_v8 = vld [vmem:[%s1811_s4 + $0x18] sm:$0xff]  ;;  %p1600_p13 = scmp.ne.s32.totalorder %s2011_s16, %s1599_s29 }
  0x1d   : > { %v425_v5 = vld [vmem:[%s1811_s4 + $0x1] sm:$0xff]  ;;  %1423 = vmatprep.mubr.msk.f32.mxu0 %vm205_vm1, %v188_v4  ;;  %v426_v7 = vld [vmem:[%s1811_s4 + $0x9] sm:$0xff]  ;;  %v427_v9 = vld [vmem:[%s1811_s4 + $0x19] sm:$0xff] }
  0x1e   : > { %1449 = vmatprep.mubr.msk.f32.mxu1 %vm205_vm1, %v425_v5  ;;  %1424 = vmatmul.mubr.msk.f32.vlgmr.msra.gmra.mxu0 %vm205_vm1, %v189_v6  ;;  %v191_v10 = vld [vmem:[%s1811_s4 + $0x20] sm:$0xff]  ;;  %v192_v12 = vld [vmem:[%s1811_s4 + $0x30] sm:$0xff]  ;;  %v193_v14 = vld [vmem:[%s1811_s4 + $0x38] sm:$0xff]  ;;  %p1601_p0 = pnand %p1600_p13, %p1767_p3 }
  0x1f   : > { %1450 = vmatmul.mubr.msk.f32.vlgmr.msra.gmra.mxu1 %vm205_vm1, %v426_v7  ;;  %1474 = vmatpush3.msk.msra.mxu0 %vm254_vm0, %v1295_v2  ;;  %v428_v11 = vld [vmem:[%s1811_s4 + $0x21] sm:$0xff]  ;;  %v429_v13 = vld [vmem:[%s1811_s4 + $0x31] sm:$0xff]  ;;  %v430_v15 = vld [vmem:[%s1811_s4 + $0x39] sm:$0xff] }
  0x20   : > { %1500 = vmatpush3.msk.msra.mxu1 %vm254_vm0, %v1329_v3  ;;  %1426 = vmatprep.mubr.msk.f32.mxu0 %vm205_vm1, %v190_v8  ;;  %v194_v16 = vld [vmem:[%s1811_s4 + $0x48] sm:$0xff]  ;;  %v195_v18 = vld [vmem:[%s1811_s4 + $0x50] sm:$0xff]  ;;  %v196_v20 = vld [vmem:[%s1811_s4 + $0x60] sm:$0xff]  ;;  %p1602_p1 = pneg %p1601_p0 }
  0x21   : > { %1452 = vmatprep.mubr.msk.f32.mxu1 %vm205_vm1, %v427_v9  ;;  %v431_v17 = vld [vmem:[%s1811_s4 + $0x49] sm:$0xff]  ;;  %v432_v19 = vld [vmem:[%s1811_s4 + $0x51] sm:$0xff]  ;;  %v433_v21 = vld [vmem:[%s1811_s4 + $0x61] sm:$0xff] }
  0x22   : > { %1427 = vmatmul.mubr.msk.f32.gmra.mxu0 %vm205_vm1, %v191_v10  ;;  %v197_v22 = vld [vmem:[%s1811_s4 + $0x68] sm:$0xff]  ;;  %v198_v24 = vld [vmem:[%s1811_s4 + $0x78] sm:$0xff]  ;;  %v199_v26 = vld [vmem:[%s1811_s4 + $0x80] sm:$0xff] }
  0x23   : > { %1453 = vmatmul.mubr.msk.f32.gmra.mxu1 %vm205_vm1, %v428_v11  ;;  %1429 = vmatprep.mubr.msk.f32.mxu0 %vm205_vm1, %v192_v12  ;;  %v434_v23 = vld [vmem:[%s1811_s4 + $0x69] sm:$0xff]  ;;  %v435_v25 = vld [vmem:[%s1811_s4 + $0x79] sm:$0xff]  ;;  %v436_v27 = vld [vmem:[%s1811_s4 + $0x81] sm:$0xff] }
  0x24   : > { %1455 = vmatprep.mubr.msk.f32.mxu1 %vm205_vm1, %v429_v13  ;;  %v200_v28 = vld [vmem:[%s1811_s4 + $0x90] sm:$0xff]  ;;  %v201_v30 = vld [vmem:[%s1811_s4 + $0x98] sm:$0xff]  ;;  %v202_v32 = vld [vmem:[%s1811_s4 + $0xa8] sm:$0xff] }
  0x25   : > { %v437_v29 = vld [vmem:[%s1811_s4 + $0x91] sm:$0xff]  ;;  %v438_v31 = vld [vmem:[%s1811_s4 + $0x99] sm:$0xff]  ;;  %v439_v33 = vld [vmem:[%s1811_s4 + $0xa9] sm:$0xff] }
  0x26   : > { %1430 = vmatmul.mubr.msk.f32.gmra.mxu0 %vm205_vm1, %v193_v14  ;;  %v203_v34 = vld [vmem:[%s1811_s4 + $0xb0] sm:$0xff]  ;;  %v1293_v36 = vld [vmem:[%s1811_s4 + $0xc0] sm:$0xff]  ;;  %v1294_v38 = vld [vmem:[%s1811_s4 + $0xc8] sm:$0xff] }
  0x27   : > { %1456 = vmatmul.mubr.msk.f32.gmra.mxu1 %vm205_vm1, %v430_v15  ;;  %1432 = vmatprep.mubr.msk.f32.mxu0 %vm205_vm1, %v194_v16  ;;  %v440_v35 = vld [vmem:[%s1811_s4 + $0xb1] sm:$0xff]  ;;  %v1327_v37 = vld [vmem:[%s1811_s4 + $0xc1] sm:$0xff]  ;;  %v1328_v39 = vld [vmem:[%s1811_s4 + $0xc9] sm:$0xff]  ;;  %s1693_s4 = smov [#allocation2]  }
  0x28   : > { %1458 = vmatprep.mubr.msk.f32.mxu1 %vm205_vm1, %v431_v17  ;;  %s1603_s5 = sshll.u32 %s1693_s4, 4  ;;  %s1604_s5 = int_to_ptr.vmem [resolvable:$false] %s1603_s5 }
  0x29   : > { %s1605_s6 = scalar_lea.vmem %s1604_s5, 4096  ;;  %p1606_p2 = scmp.lt.s32.totalorder %s2011_s16, %s1604_s5 }
  0x2a   : > { %1433 = vmatmul.mubr.msk.f32.gmra.mxu0 %vm205_vm1, %v195_v18  ;;  %p1607_p4 = scmp.lt.s32.totalorder %s1605_s6, %s1599_s29 }
  0x2b   : > { %1459 = vmatmul.mubr.msk.f32.gmra.mxu1 %vm205_vm1, %v432_v19  ;;  %1435 = vmatprep.mubr.msk.f32.mxu0 %vm205_vm1, %v196_v20 }
  0x2c   : > { %1461 = vmatprep.mubr.msk.f32.mxu1 %vm205_vm1, %v433_v21  ;;  %p1608_p5 = por %p1607_p4, %p1606_p2 }
  0x2e   : > { %1436 = vmatmul.mubr.msk.f32.gmra.mxu0 %vm205_vm1, %v197_v22  ;;  %p1609_p6 = pnand %p1608_p5, %p1602_p1 }
  0x2f   : > { %1462 = vmatmul.mubr.msk.f32.gmra.mxu1 %vm205_vm1, %v434_v23  ;;  %1438 = vmatprep.mubr.msk.f32.mxu0 %vm205_vm1, %v198_v24 }
  0x30   : > { %1464 = vmatprep.mubr.msk.f32.mxu1 %vm205_vm1, %v435_v25 }
  0x32   : > { %1439 = vmatmul.mubr.msk.f32.gmra.mxu0 %vm205_vm1, %v199_v26 }
  0x33   : > { %1465 = vmatmul.mubr.msk.f32.gmra.mxu1 %vm205_vm1, %v436_v27  ;;  %1441 = vmatprep.mubr.msk.f32.mxu0 %vm205_vm1, %v200_v28 }
  0x34   : > { %1467 = vmatprep.mubr.msk.f32.mxu1 %vm205_vm1, %v437_v29 }
  0x36   : > { %1442 = vmatmul.mubr.msk.f32.gmra.mxu0 %vm205_vm1, %v201_v30 }
  0x37   : > { %1468 = vmatmul.mubr.msk.f32.gmra.mxu1 %vm205_vm1, %v438_v31  ;;  %1444 = vmatprep.mubr.msk.f32.mxu0 %vm205_vm1, %v202_v32 }
  0x38   : > { %1470 = vmatprep.mubr.msk.f32.mxu1 %vm205_vm1, %v439_v33 }
  0x3a   : > { %1445 = vmatmul.mubr.msk.f32.gmra.mxu0 %vm205_vm1, %v203_v34 }
  0x3b   : > { %1471 = vmatmul.mubr.msk.f32.gmra.mxu1 %vm205_vm1, %v440_v35  ;;  %1475 = vmatprep.mubr.msk.f32.mxu0 %vm205_vm1, %v190_v8 }
  0x3c   : > { %1501 = vmatprep.mubr.msk.f32.mxu1 %vm205_vm1, %v427_v9 }
  0x3e   : > { %1476 = vmatmul.mubr.msk.f32.vlgmr.msra.gmra.mxu0 %vm205_vm1, %v191_v10 }
  0x3f   : > { %1502 = vmatmul.mubr.msk.f32.vlgmr.msra.gmra.mxu1 %vm205_vm1, %v428_v11  ;;  %1478 = vmatprep.mubr.msk.f32.mxu0 %vm205_vm1, %v192_v12 }
  0x40   : > { %1504 = vmatprep.mubr.msk.f32.mxu1 %vm205_vm1, %v429_v13 }
  0x42   : > { %1479 = vmatmul.mubr.msk.f32.gmra.mxu0 %vm205_vm1, %v193_v14 }
  0x43   : > { %1505 = vmatmul.mubr.msk.f32.gmra.mxu1 %vm205_vm1, %v430_v15  ;;  %1481 = vmatprep.mubr.msk.f32.mxu0 %vm205_vm1, %v194_v16 }
  0x44   : > { %1507 = vmatprep.mubr.msk.f32.mxu1 %vm205_vm1, %v431_v17 }
  0x46   : > { %1482 = vmatmul.mubr.msk.f32.gmra.mxu0 %vm205_vm1, %v195_v18 }
  0x47   : > { %1508 = vmatmul.mubr.msk.f32.gmra.mxu1 %vm205_vm1, %v432_v19  ;;  %1484 = vmatprep.mubr.msk.f32.mxu0 %vm205_vm1, %v196_v20 }
  0x48   : > { %1510 = vmatprep.mubr.msk.f32.mxu1 %vm205_vm1, %v433_v21 }
  0x4a   : > { %1485 = vmatmul.mubr.msk.f32.gmra.mxu0 %vm205_vm1, %v197_v22 }
  0x4b   : > { %1511 = vmatmul.mubr.msk.f32.gmra.mxu1 %vm205_vm1, %v434_v23  ;;  %1487 = vmatprep.mubr.msk.f32.mxu0 %vm205_vm1, %v198_v24 }
  0x4c   : > { %1513 = vmatprep.mubr.msk.f32.mxu1 %vm205_vm1, %v435_v25 }
  0x4e   : > { %1488 = vmatmul.mubr.msk.f32.gmra.mxu0 %vm205_vm1, %v199_v26 }
  0x4f   : > { %1514 = vmatmul.mubr.msk.f32.gmra.mxu1 %vm205_vm1, %v436_v27  ;;  %1490 = vmatprep.mubr.msk.f32.mxu0 %vm205_vm1, %v200_v28 }
  0x50   : > { %1516 = vmatprep.mubr.msk.f32.mxu1 %vm205_vm1, %v437_v29 }
  0x52   : > { %1491 = vmatmul.mubr.msk.f32.gmra.mxu0 %vm205_vm1, %v201_v30 }
  0x53   : > { %1517 = vmatmul.mubr.msk.f32.gmra.mxu1 %vm205_vm1, %v438_v31  ;;  %1493 = vmatprep.mubr.msk.f32.mxu0 %vm205_vm1, %v202_v32 }
  0x54   : > { %1519 = vmatprep.mubr.msk.f32.mxu1 %vm205_vm1, %v439_v33 }
  0x56   : > { %1494 = vmatmul.mubr.msk.f32.gmra.mxu0 %vm205_vm1, %v203_v34 }
  0x57   : > { %1520 = vmatmul.mubr.msk.f32.gmra.mxu1 %vm205_vm1, %v440_v35  ;;  %1496 = vmatprep.mubr.msk.f32.mxu0 %vm205_vm1, %v1293_v36 }
  0x58   : > { %1522 = vmatprep.mubr.msk.f32.mxu1 %vm205_vm1, %v1327_v37 }
  0x5a   : > { %1497 = vmatmul.mubr.msk.f32.gmra.mxu0 %vm205_vm1, %v1294_v38 }
  0x5b   : > { %1523 = vmatmul.mubr.msk.f32.gmra.mxu1 %vm205_vm1, %v1328_v39 }
  0xde   : > { %v1425_v40 = vpop.f32.mrf.mxu0 }
  0xdf   : > { %v1451_v41 = vpop.f32.mrf.mxu1  ;;  %v410_v5 = vadd.f32 %v1425_v40, %v1934_v0 }
  0xe0   : > { %v324_v42 = vpop.f32.mrf.mxu0 }
  0xe1   : > { %v560_v43 = vpop.f32.mrf.mxu1  ;;  %v409_v8 = vadd.f32 %v1934_v0, %v324_v42  ;;  %v640_v11 = vadd.f32 %v1451_v41, %v410_v5 }
  0xe2   : > { %v1428_v44 = vpop.f32.mrf.mxu0 }
  0xe3   : > { %v1454_v45 = vpop.f32.mrf.mxu1  ;;  %v412_v12 = vadd.f32 %v1428_v44, %v1934_v0  ;;  %v639_v15 = vadd.f32 %v560_v43, %v409_v8 }
  0xe4   : > { %v334_v46 = vpop.f32.mrf.mxu0 }
  0xe5   : > { %v570_v47 = vpop.f32.mrf.mxu1  ;;  %v411_v16 = vadd.f32 %v1934_v0, %v334_v46  ;;  %v642_v20 = vadd.f32 %v1454_v45, %v412_v12 }
  0xe6   : > { %v1431_v48 = vpop.f32.mrf.mxu0 }
  0xe7   : > { %v1457_v49 = vpop.f32.mrf.mxu1  ;;  %v414_v21 = vadd.f32 %v1431_v48, %v1934_v0  ;;  %v641_v26 = vadd.f32 %v570_v47, %v411_v16 }
  0xe8   : > { %v344_v50 = vpop.f32.mrf.mxu0 }
  0xe9   : > { %v580_v51 = vpop.f32.mrf.mxu1  ;;  %v413_v27 = vadd.f32 %v1934_v0, %v344_v50  ;;  %v644_v32 = vadd.f32 %v1457_v49, %v414_v21 }
  0xea   : > { %v1434_v52 = vpop.f32.mrf.mxu0 }
  0xeb   : > { %v1460_v53 = vpop.f32.mrf.mxu1  ;;  %v416_v33 = vadd.f32 %v1434_v52, %v1934_v0  ;;  %v643_v38 = vadd.f32 %v580_v51, %v413_v27 }
  0xec   : > { %v354_v54 = vpop.f32.mrf.mxu0 }
  0xed   : > { %v1915_v55 = vpop.f32.mrf.mxu1  ;;  %v415_v39 = vadd.f32 %v1934_v0, %v354_v54  ;;  %v646_v44 = vadd.f32 %v1460_v53, %v416_v33 }
  0xee   : > { %v1437_v56 = vpop.f32.mrf.mxu0 }
  0xef   : > { %v1917_v57 = vpop.f32.mrf.mxu1  ;;  %v418_v45 = vadd.f32 %v1437_v56, %v1934_v0  ;;  %v645_v50 = vadd.f32 %v1915_v55, %v415_v39 }
  0xf0   : > { %v1919_v58 = vpop.f32.mrf.mxu0 }
  0xf1   : > { %v1921_v59 = vpop.f32.mrf.mxu1  ;;  %v417_v51 = vadd.f32 %v1934_v0, %v1919_v58  ;;  %v648_v53 = vadd.f32 %v1917_v57, %v418_v45 }
  0xf2   : > { %v1923_v60 = vpop.f32.mrf.mxu0 }
  0xf3   : > { %v1925_v61 = vpop.f32.mrf.mxu1  ;;  %v420_v56 = vadd.f32 %v1923_v60, %v1934_v0 }
  0xf4   : > { %v1927_v62 = vpop.f32.mrf.mxu0 }
  0xf5   : > { %v1929_v63 = vpop.f32.mrf.mxu1  ;;  %v419_v58 = vadd.f32 %v1934_v0, %v1927_v62 }
  0xf6   : > { %v1936_v1 = vpop.f32.mrf.mxu0 }
  0xf7   : > { %v1938_v2 = vpop.f32.mrf.mxu1  ;;  %v422_v60 = vadd.f32 %v1936_v1, %v1934_v0  ;;  %v649_v62 = vadd.f32 %v1929_v63, %v419_v58 }
  0xf8   : > { %v1940_v3 = vpop.f32.mrf.mxu0 }
  0xf9   : > { %v1942_v4 = vpop.f32.mrf.mxu1  ;;  %v652_v1 = vadd.f32 %v1938_v2, %v422_v60 }
  0xfa   : > { %v1945_v6 = vpop.f32.mrf.mxu0 }
  0xfb   : > { %v1947_v7 = vpop.f32.mrf.mxu1 }
  0xfc   : > { %v1951_v9 = vpop.f32.mrf.mxu0 }
  0xfd   : > { %v1953_v10 = vpop.f32.mrf.mxu1 }
  0xfe   : > { %v1477_v13 = vpop.f32.mrf.mxu0 }
  0xff   : > { %v1503_v14 = vpop.f32.mrf.mxu1  ;;  %v873_v17 = vadd.f32 %v1477_v13, %v640_v11 }
 0x100   : > { %v793_v18 = vpop.f32.mrf.mxu0 }
 0x101   : > { %v1023_v19 = vpop.f32.mrf.mxu1  ;;  %v1103_v22 = vadd.f32 %v1503_v14, %v873_v17  ;;  %v872_v23 = vadd.f32 %v793_v18, %v639_v15  ;;  %v647_v14 = vadd.f32 %v1921_v59, %v417_v51  ;;  %v650_v18 = vadd.f32 %v1925_v61, %v420_v56 }
 0x102   : > { %v1480_v24 = vpop.f32.mrf.mxu0 }
 0x103   : > { %v1506_v25 = vpop.f32.mrf.mxu1  ;;  %1119 = vst [vmem:[%s1961_s9 + $0x8] sm:$0xff] %v1103_v22  ;;  %v1102_v28 = vadd.f32 %v1023_v19, %v872_v23  ;;  %v875_v29 = vadd.f32 %v1480_v24, %v642_v20  ;;  %v421_v22 = vadd.f32 %v1934_v0, %v1940_v3 }
 0x104   : > { %v803_v30 = vpop.f32.mrf.mxu0 }
 0x105   : > { %v1033_v31 = vpop.f32.mrf.mxu1  ;;  %1118 = vst [vmem:[%s1961_s9] sm:$0xff] %v1102_v28  ;;  %v1105_v34 = vadd.f32 %v1506_v25, %v875_v29  ;;  %v874_v35 = vadd.f32 %v803_v30, %v641_v26  ;;  %v424_v26 = vadd.f32 %v1945_v6, %v1934_v0  ;;  %v651_v3 = vadd.f32 %v1942_v4, %v421_v22 }
 0x106   : > { %v1483_v36 = vpop.f32.mrf.mxu0  ;;  %v423_v30 = vadd.f32 %v1934_v0, %v1951_v9 }
 0x107   : > { %v1509_v37 = vpop.f32.mrf.mxu1  ;;  %1121 = vst [vmem:[%s1961_s9 + $0x18] sm:$0xff] %v1105_v34  ;;  %v1104_v40 = vadd.f32 %v1033_v31, %v874_v35  ;;  %v877_v41 = vadd.f32 %v1483_v36, %v644_v32  ;;  %v654_v33 = vadd.f32 %v1947_v7, %v424_v26 }
 0x108   : > { %v813_v42 = vpop.f32.mrf.mxu0  ;;  %v653_v4 = vadd.f32 %v1953_v10, %v423_v30 }
 0x109   : > { %v1043_v43 = vpop.f32.mrf.mxu1  ;;  %1120 = vst [vmem:[%s1961_s9 + $0x10] sm:$0xff] %v1104_v40  ;;  %v1107_v46 = vadd.f32 %v1509_v37, %v877_v41  ;;  %v876_v47 = vadd.f32 %v813_v42, %v643_v38 }
 0x10a   : > { %v1486_v48 = vpop.f32.mrf.mxu0 }
 0x10b   : > { %v1512_v49 = vpop.f32.mrf.mxu1  ;;  %1123 = vst [vmem:[%s1961_s9 + $0x28] sm:$0xff] %v1107_v46  ;;  %v1106_v52 = vadd.f32 %v1043_v43, %v876_v47  ;;  %v879_v54 = vadd.f32 %v1486_v48, %v646_v44 }
 0x10c   : > { %v823_v5 = vpop.f32.mrf.mxu0 }
 0x10d   : > { %v1053_v8 = vpop.f32.mrf.mxu1  ;;  %1122 = vst [vmem:[%s1961_s9 + $0x20] sm:$0xff] %v1106_v52  ;;  %v1109_v11 = vadd.f32 %v1512_v49, %v879_v54  ;;  %v878_v12 = vadd.f32 %v823_v5, %v645_v50 }
 0x10e   : > { %v1489_v13 = vpop.f32.mrf.mxu0 }
 0x10f   : > { %v1515_v55 = vpop.f32.mrf.mxu1  ;;  %1125 = vst [vmem:[%s1961_s9 + $0x38] sm:$0xff] %v1109_v11  ;;  %v1108_v15 = vadd.f32 %v1053_v8, %v878_v12  ;;  %v881_v16 = vadd.f32 %v1489_v13, %v648_v53 }
 0x110   : > { %v833_v17 = vpop.f32.mrf.mxu0 }
 0x111   : > { %v1063_v57 = vpop.f32.mrf.mxu1  ;;  %1124 = vst [vmem:[%s1961_s9 + $0x30] sm:$0xff] %v1108_v15  ;;  %v1111_v19 = vadd.f32 %v1515_v55, %v881_v16  ;;  %v880_v20 = vadd.f32 %v833_v17, %v647_v14 }
 0x112   : > { %v1492_v59 = vpop.f32.mrf.mxu0 }
 0x113   : > { %v1518_v21 = vpop.f32.mrf.mxu1  ;;  %1127 = vst [vmem:[%s1961_s9 + $0x48] sm:$0xff] %v1111_v19  ;;  %v1110_v23 = vadd.f32 %v1063_v57, %v880_v20  ;;  %v883_v61 = vadd.f32 %v1492_v59, %v650_v18 }
 0x114   : > { %v843_v24 = vpop.f32.mrf.mxu0 }
 0x115   : > { %v1073_v25 = vpop.f32.mrf.mxu1  ;;  %1126 = vst [vmem:[%s1961_s9 + $0x40] sm:$0xff] %v1110_v23  ;;  %v1113_v27 = vadd.f32 %v1518_v21, %v883_v61  ;;  %v882_v28 = vadd.f32 %v843_v24, %v649_v62 }
 0x116   : > { %v1495_v63 = vpop.f32.mrf.mxu0 }
 0x117   : > { %v1521_v29 = vpop.f32.mrf.mxu1  ;;  %1129 = vst [vmem:[%s1961_s9 + $0x58] sm:$0xff] %v1113_v27  ;;  %v1112_v31 = vadd.f32 %v1073_v25, %v882_v28  ;;  %v885_v2 = vadd.f32 %v1495_v63, %v652_v1 }
 0x118   : > { %v853_v32 = vpop.f32.mrf.mxu0 }
 0x119   : > { %v1083_v6 = vpop.f32.mrf.mxu1  ;;  %1128 = vst [vmem:[%s1961_s9 + $0x50] sm:$0xff] %v1112_v31  ;;  %v1115_v34 = vadd.f32 %v1521_v29, %v885_v2  ;;  %v884_v35 = vadd.f32 %v853_v32, %v651_v3 }
 0x11a   : > { %v1498_v36 = vpop.f32.mrf.mxu0 }
 0x11b   : > { %v1524_v37 = vpop.f32.mrf.mxu1  ;;  %1131 = vst [vmem:[%s1961_s9 + $0x68] sm:$0xff] %v1115_v34  ;;  %v1114_v0 = vadd.f32 %v1083_v6, %v884_v35  ;;  %v887_v9 = vadd.f32 %v1498_v36, %v654_v33 }
 0x11c   : > { %v863_v38 = vpop.f32.mrf.mxu0 }
 0x11d   : > { %1130 = vst [vmem:[%s1961_s9 + $0x60] sm:$0xff] %v1114_v0  ;;  %v1117_v39 = vadd.f32 %v1524_v37, %v887_v9  ;;  %v886_v7 = vadd.f32 %v863_v38, %v653_v4  ;;  %v1093_v40 = vpop.f32.mrf.mxu1 }
 0x11f   : > { %1133 = vst [vmem:[%s1961_s9 + $0x78] sm:$0xff] %v1117_v39  ;;  %v1116_v10 = vadd.f32 %v1093_v40, %v886_v7 }
 0x121   : > { %1132 = vst [vmem:[%s1961_s9 + $0x70] sm:$0xff] %v1116_v10 }
 0x122   : > { %1612 = shalt.err (!%p1609_p6)
}
 0x123   : > { %s1613_s7 = scalar_lea.hbm %s2009_s27, 2048  ;;  %s1617_s10 = scalar_lea.hbm %s2071_s3, 8192 }
 0x124   : > { %p1614_p7 = scmp.ne.s32.totalorder %s2009_s27, %s1613_s7  ;;  %p1618_p11 = scmp.lt.s32.totalorder %s2009_s27, %s2071_s3 }
 0x125   : > { %p1619_p12 = scmp.lt.s32.totalorder %s1617_s10, %s1613_s7 }
 0x126   : > { %p1615_p9 = pnand %p1614_p7, %p1767_p3 }
 0x127   : > { %p1620_p13 = por %p1619_p12, %p1618_p11 }
 0x128   : > { %p1616_p10 = pneg %p1615_p9 }
 0x12a   : > { %p1621_p0 = pnand %p1620_p13, %p1616_p10 }
 0x12c   : > { %1624 = shalt.err (!%p1621_p0)
}
 0x12d   : > { %s1694_s15 = smov 128   ;;  %s1695_s21 = smov 8  }
 0x12e   : > { %1526 = dma.vmem_to_hbm [thread:$0]  (%p1767_p3), %s2011_s16, 2048, %s2009_s27, %s2017_s28, %s1694_s15, %s1694_s15, %s1695_s21  }
 0x12f PF: > { %p1532_p1 = scmp.ge.s32.totalorder %s1691_s19, 2  ;;  %s1165_s24 = sand.u32 1, %s1663_s12  }
 0x130   : > { %s1166_s29 = scalar_lea.sflag [#allocation3], %s1165_s24 }
 0x131   : > { %p1529_p2 = pnand %p1532_p1, %p1776_p8 }
 0x133   : > { %p1530_p4 = pneg %p1529_p2 }
 0x135   : > { %1658 = dma.done.wait (%p1530_p4), %s1166_s29, 2048  }
 0x136   : > { %1660 = vsyncadd (%p1530_p4), %s1166_s29, 4294965248  ;;  %s16_s19 = sadd.s32 1, %s1691_s19   ;;  %s2074_s12 = smov %s1667_s13 }
 0x137   : > { %p13_p5 = scmp.ge.s32.totalorder %s16_s19, 6   ;;  %s2075_s13 = smov %s1671_s14 }
 0x138   : > { %s2076_s14 = smov %s1785_s30  ;;  %s2077_s15 = smov %s1683_s17 }
 0x139   : > { %s2078_s16 = smov %s1687_s18  ;;  %s2079_s17 = smov %s2082_s22 }
 0x13a   : > { %s2080_s18 = smov %s2086_s23  ;;  %15 = sbr.rel (!%p13_p5) target bundleno = 5 (0x5), region = 72 }
 0x13f   :  { %1171 = vsyncpa [#allocation3], 1 }
 0x140   :  { %1173 = vsyncpa [#allocation3 + $0x1], 1 }

</bundles_post_ra>
